<compile_context>
chip_gen: v7x
topology: tpu7x:2x2x1
jax: 0.10.0
libtpu: 0.0.40
codegen_flags: <defaults>
</compile_context>

<pallas_src>
import jax
import jax.numpy as jnp
import numpy as np
from jax.experimental import pallas as pl
from jax.experimental.pallas import tpu as pltpu

GROWTH_RATE = 12
BN_EPS = 1e-5


def _make_kernel(C, H, W, G, B_tile):
    HW = H * W
    L = B_tile * HW

    def kernel(x_ref, scale_ref, shift_ref, w_ref, out_ref):
        # x_ref:     (C, L)    f32, B_tile images with batch folded into lanes
        # scale_ref: (C, 1)    f32, folded BN scale
        # shift_ref: (C, 1)    f32, folded BN shift
        # w_ref:     (G, 9*C)  bf16, conv weights, column = (kh*3+kw)*C + c
        # out_ref:   (G+C, L)  f32
        x = x_ref[...]                                          # (C, L)

        # Fused BN(eval) -> ChannelSelection(identity) -> ReLU in f32
        # (v5e VPU has no bf16 path; cast only at the matmul boundary).
        act = jnp.maximum(x * scale_ref[...] + shift_ref[...], 0.0)

        # Per-image boundary masks from pos = lane % HW (both HW and W are
        # powers of two -> cheap).  They reproduce SAME zero padding exactly
        # and also zero any roll wrap across image / batch-block boundaries.
        lane = jax.lax.broadcasted_iota(jnp.int32, (1, L), 1)
        pos = lane % HW
        col = pos % W
        h_masks = [pos >= W, None, pos < (H - 1) * W]           # dh = -1, 0, +1
        w_masks = [col >= 1, None, col < (W - 1)]               # dw = -1, 0, +1

        # Build the 9 im2col taps fully in registers (no VMEM scratch
        # roundtrip); cast each tap to bf16 for the MXU.
        taps = []
        for kh in range(3):
            dh = kh - 1
            for kw in range(3):
                dw = kw - 1
                off = dh * W + dw                               # flattened source offset
                if off == 0:
                    tap = act
                else:
                    # tap[l] = act[(l + off) mod L]  (np.roll convention)
                    tap = pltpu.roll(act, shift=(-off) % L, axis=1)
                m = h_masks[kh]
                if w_masks[kw] is not None:
                    m = w_masks[kw] if m is None else jnp.logical_and(m, w_masks[kw])
                if m is not None:
                    tap = jnp.where(m, tap, 0.0)                # exact zero padding
                taps.append(tap.astype(jnp.bfloat16))
        im2col = jnp.concatenate(taps, axis=0)                  # (9C, L) bf16

        # One MXU matmul for the whole batch tile: bf16 operands, f32 acc.
        acc = jnp.dot(w_ref[...], im2col,
                      preferred_element_type=jnp.float32)       # (G, L) f32

        # torch.cat((conv_out, x), dim=channel): single full aligned store
        # (G + C is a multiple of 8; L is a multiple of 128).
        out_ref[...] = jnp.concatenate([acc.astype(out_ref.dtype), x], axis=0)

    return kernel


def _choose_b_tile(N, C, H, W, G):
    """Images per grid step: big enough to amortize per-step overhead, small
    enough for every generation's VMEM, and >= 2 grid steps when possible."""
    HW = H * W
    hbm_bytes_per_image = (C + (G + C)) * HW * 4                # f32 in + f32 out
    target_bytes = 1 << 20                                      # ~1 MiB per step
    bt = max(1, target_bytes // hbm_bytes_per_image)
    # VMEM estimate per image: double-buffered in/out blocks + bf16 im2col +
    # f32 activations (in registers/VMEM).
    vmem_per_image = (2 * C + 2 * (G + C)) * HW * 4 + 9 * C * HW * 2 + C * HW * 4
    bt = min(bt, max(1, (8 << 20) // vmem_per_image))           # safe on v5e/v6e/v7x defaults
    if N >= 2:
        bt = min(bt, pl.cdiv(N, 2))                             # keep 2+ steps for v7x's 2 TCs
    return int(min(bt, N))


def basic_block_forward(x, gamma, beta, running_mean, running_var, conv_w,
                        eps=BN_EPS):
    """x: (N, C, H, W); conv_w: (G, C, 3, 3). Returns (N, G + C, H, W)."""
    N, C, H, W = x.shape
    G = conv_w.shape[0]
    HW = H * W

    # Fold BN into per-channel scale/shift (eval mode).
    scale = gamma / jnp.sqrt(running_var + eps)
    shift = beta - running_mean * scale
    scale2 = scale.reshape(C, 1).astype(jnp.float32)
    shift2 = shift.reshape(C, 1).astype(jnp.float32)

    # (G, C, 3, 3) -> (G, 3, 3, C) -> (G, 9*C): column = (kh*3+kw)*C + c,
    # matching the in-kernel im2col row order.  bf16 for MXU-native operands.
    w2 = jnp.transpose(conv_w, (0, 2, 3, 1)).reshape(G, 9 * C).astype(jnp.bfloat16)

    # Lane-dense layout with batch folded into the lane axis: (C, N*HW).
    x2 = jnp.transpose(x.reshape(N, C, HW), (1, 0, 2)).reshape(C, N * HW)

    B_tile = _choose_b_tile(N, C, H, W, G)
    L = B_tile * HW
    grid = (pl.cdiv(N, B_tile),)

    kernel = _make_kernel(C, H, W, G, B_tile)
    out2 = pl.pallas_call(
        kernel,
        out_shape=jax.ShapeDtypeStruct((G + C, N * HW), x.dtype),
        grid_spec=pltpu.PrefetchScalarGridSpec(
            num_scalar_prefetch=0,
            grid=grid,
            in_specs=[
                pl.BlockSpec((C, L), lambda i: (0, i)),
                pl.BlockSpec((C, 1), lambda i: (0, 0)),
                pl.BlockSpec((C, 1), lambda i: (0, 0)),
                pl.BlockSpec((G, 9 * C), lambda i: (0, 0)),
            ],
            out_specs=pl.BlockSpec((G + C, L), lambda i: (0, i)),
        ),
        compiler_params=pltpu.CompilerParams(
            dimension_semantics=("parallel",)),
    )(x2, scale2, shift2, w2)

    # (G+C, N*HW) -> (N, G+C, H, W)
    return jnp.transpose(out2.reshape(G + C, N, H, W), (1, 0, 2, 3))


def reference_forward(x, gamma, beta, running_mean, running_var, conv_w,
                      eps=BN_EPS):
    xn = (x - running_mean[None, :, None, None]) / jnp.sqrt(
        running_var[None, :, None, None] + eps)
    xn = xn * gamma[None, :, None, None] + beta[None, :, None, None]
    act = jnp.maximum(xn, 0.0)
    conv = jax.lax.conv_general_dilated(
        act, conv_w, window_strides=(1, 1), padding="SAME",
        dimension_numbers=("NCHW", "OIHW", "NCHW"),
        precision=jax.lax.Precision.HIGHEST)
    return jnp.concatenate([conv, x], axis=1)


if __name__ == "__main__":
    # Small shapes consistent with the module: N=2, inplanes=cfg=4, 16x16 spatial.
    N, C, H, W = 2, 4, 16, 16
    G = GROWTH_RATE

    key = jax.random.PRNGKey(0)
    kx, kg, kb, km, kv, kw = jax.random.split(key, 6)

    x = jax.random.normal(kx, (N, C, H, W), dtype=jnp.float32)

    # Deterministic synthetic parameters (BatchNorm2d + Conv2d 3x3, no bias).
    gamma = jax.random.uniform(kg, (C,), minval=0.5, maxval=1.5,
                               dtype=jnp.float32)
    beta = 0.1 * jax.random.normal(kb, (C,), dtype=jnp.float32)
    running_mean = 0.1 * jax.random.normal(km, (C,), dtype=jnp.float32)
    running_var = jax.random.uniform(kv, (C,), minval=0.5, maxval=1.5,
                                     dtype=jnp.float32)
    fan_in = C * 3 * 3
    conv_w = jax.random.normal(kw, (G, C, 3, 3), dtype=jnp.float32) * np.sqrt(
        2.0 / fan_in)

    out = basic_block_forward(x, gamma, beta, running_mean, running_var, conv_w)
    out = jax.block_until_ready(out)

    ref = reference_forward(x, gamma, beta, running_mean, running_var, conv_w)
    assert out.shape == (N, G + C, H, W)

    # Conv channels: bf16 MXU operands with f32 accumulation -> loose tolerance.
    np.testing.assert_allclose(np.asarray(out[:, :G]), np.asarray(ref[:, :G]),
                               rtol=3e-2, atol=3e-2)
    # Passthrough channels: exact f32 copy of x.
    np.testing.assert_allclose(np.asarray(out[:, G:]), np.asarray(x),
                               rtol=1e-6, atol=1e-6)

    print("KERNEL_OK")
</pallas_src>

<mosaic_0001>
module attributes {stable_mosaic.version = 11 : i64} {
  func.func @kernel(%arg0: i32, %arg1: memref<4x256xf32, #tpu.memory_space<vmem>>, %arg2: memref<4x1xf32, #tpu.memory_space<vmem>>, %arg3: memref<4x1xf32, #tpu.memory_space<vmem>>, %arg4: memref<12x36xbf16, #tpu.memory_space<vmem>>, %arg5: memref<16x256xf32, #tpu.memory_space<vmem>>) attributes {dimension_semantics = [#tpu.dimension_semantics<parallel>], iteration_bounds = array<i64: 2>, scalar_prefetch = 0 : i64, scratch_operands = 0 : i64, tpu.core_type = #tpu.core_type<tc>, window_params = [{transform_indices = @transform_0, window_bounds = array<i64: 4, 256>}, {pipeline_mode = #tpu.pipeline_mode<synchronous>, transform_indices = @transform_1, window_bounds = array<i64: 4, 1>}, {pipeline_mode = #tpu.pipeline_mode<synchronous>, transform_indices = @transform_2, window_bounds = array<i64: 4, 1>}, {pipeline_mode = #tpu.pipeline_mode<synchronous>, transform_indices = @transform_3, window_bounds = array<i64: 12, 36>}, {transform_indices = @transform_4, window_bounds = array<i64: 16, 256>}]} {
    %c0 = arith.constant 0 : index
    %c0_0 = arith.constant 0 : index
    %0 = vector.load %arg1[%c0, %c0_0] : memref<4x256xf32, #tpu.memory_space<vmem>>, vector<4x256xf32>
    %c0_1 = arith.constant 0 : index
    %c0_2 = arith.constant 0 : index
    %1 = vector.load %arg2[%c0_1, %c0_2] : memref<4x1xf32, #tpu.memory_space<vmem>>, vector<4x1xf32>
    %2 = vector.broadcast %1 : vector<4x1xf32> to vector<4x256xf32>
    %3 = arith.mulf %0, %2 : vector<4x256xf32>
    %c0_3 = arith.constant 0 : index
    %c0_4 = arith.constant 0 : index
    %4 = vector.load %arg3[%c0_3, %c0_4] : memref<4x1xf32, #tpu.memory_space<vmem>>, vector<4x1xf32>
    %5 = vector.broadcast %4 : vector<4x1xf32> to vector<4x256xf32>
    %6 = arith.addf %3, %5 : vector<4x256xf32>
    %cst = arith.constant 0.000000e+00 : f32
    %7 = vector.broadcast %cst : f32 to vector<4x256xf32>
    %8 = arith.maximumf %6, %7 : vector<4x256xf32>
    %9 = tpu.iota {dimensions = array<i32: 1>} : vector<1x256xi32>
    %c256_i32 = arith.constant 256 : i32
    %c0_i32 = arith.constant 0 : i32
    %10 = arith.cmpi eq, %c256_i32, %c0_i32 : i32
    %c1_i32 = arith.constant 1 : i32
    %11 = arith.select %10, %c1_i32, %c256_i32 : i32
    %12 = vector.broadcast %11 : i32 to vector<1x256xi32>
    %13 = arith.remsi %9, %12 : vector<1x256xi32>
    %c0_i32_5 = arith.constant 0 : i32
    %14 = vector.broadcast %c0_i32_5 : i32 to vector<1x256xi32>
    %15 = arith.cmpi ne, %13, %14 : vector<1x256xi32>
    %c0_i32_6 = arith.constant 0 : i32
    %16 = vector.broadcast %c0_i32_6 : i32 to vector<1x256xi32>
    %17 = arith.cmpi slt, %13, %16 : vector<1x256xi32>
    %c0_i32_7 = arith.constant 0 : i32
    %18 = arith.cmpi slt, %11, %c0_i32_7 : i32
    %19 = vector.broadcast %18 : i1 to vector<1x256xi1>
    %20 = vector.broadcast %19 : vector<1x256xi1> to vector<1x256xi1>
    %21 = arith.xori %17, %20 : vector<1x256xi1>
    %22 = arith.andi %21, %15 : vector<1x256xi1>
    %23 = vector.broadcast %11 : i32 to vector<1x256xi32>
    %24 = arith.addi %13, %23 : vector<1x256xi32>
    %25 = arith.select %22, %24, %13 : vector<1x256xi1>, vector<1x256xi32>
    %c16_i32 = arith.constant 16 : i32
    %c0_i32_8 = arith.constant 0 : i32
    %26 = arith.cmpi eq, %c16_i32, %c0_i32_8 : i32
    %c1_i32_9 = arith.constant 1 : i32
    %27 = arith.select %26, %c1_i32_9, %c16_i32 : i32
    %28 = vector.broadcast %27 : i32 to vector<1x256xi32>
    %29 = arith.remsi %25, %28 : vector<1x256xi32>
    %c0_i32_10 = arith.constant 0 : i32
    %30 = vector.broadcast %c0_i32_10 : i32 to vector<1x256xi32>
    %31 = arith.cmpi ne, %29, %30 : vector<1x256xi32>
    %c0_i32_11 = arith.constant 0 : i32
    %32 = vector.broadcast %c0_i32_11 : i32 to vector<1x256xi32>
    %33 = arith.cmpi slt, %29, %32 : vector<1x256xi32>
    %c0_i32_12 = arith.constant 0 : i32
    %34 = arith.cmpi slt, %27, %c0_i32_12 : i32
    %35 = vector.broadcast %34 : i1 to vector<1x256xi1>
    %36 = vector.broadcast %35 : vector<1x256xi1> to vector<1x256xi1>
    %37 = arith.xori %33, %36 : vector<1x256xi1>
    %38 = arith.andi %37, %31 : vector<1x256xi1>
    %39 = vector.broadcast %27 : i32 to vector<1x256xi32>
    %40 = arith.addi %29, %39 : vector<1x256xi32>
    %41 = arith.select %38, %40, %29 : vector<1x256xi1>, vector<1x256xi32>
    %c16_i32_13 = arith.constant 16 : i32
    %42 = vector.broadcast %c16_i32_13 : i32 to vector<1x256xi32>
    %43 = arith.cmpi sge, %25, %42 : vector<1x256xi32>
    %c240_i32 = arith.constant 240 : i32
    %44 = vector.broadcast %c240_i32 : i32 to vector<1x256xi32>
    %45 = arith.cmpi slt, %25, %44 : vector<1x256xi32>
    %c1_i32_14 = arith.constant 1 : i32
    %46 = vector.broadcast %c1_i32_14 : i32 to vector<1x256xi32>
    %47 = arith.cmpi sge, %41, %46 : vector<1x256xi32>
    %c15_i32 = arith.constant 15 : i32
    %48 = vector.broadcast %c15_i32 : i32 to vector<1x256xi32>
    %49 = arith.cmpi slt, %41, %48 : vector<1x256xi32>
    %c17_i32 = arith.constant 17 : i32
    %50 = tpu.dynamic_rotate %8 by %c17_i32 dim 1 : vector<4x256xf32>, i32 -> vector<4x256xf32>
    %51 = arith.andi %43, %47 : vector<1x256xi1>
    %cst_15 = arith.constant 0.000000e+00 : f32
    %52 = vector.shape_cast %51 : vector<1x256xi1> to vector<1x256xi1>
    %53 = vector.broadcast %52 : vector<1x256xi1> to vector<4x256xi1>
    %54 = vector.broadcast %cst_15 : f32 to vector<4x256xf32>
    %55 = arith.select %53, %50, %54 : vector<4x256xi1>, vector<4x256xf32>
    %56 = arith.truncf %55 : vector<4x256xf32> to vector<4x256xbf16>
    %c16_i32_16 = arith.constant 16 : i32
    %57 = tpu.dynamic_rotate %8 by %c16_i32_16 dim 1 : vector<4x256xf32>, i32 -> vector<4x256xf32>
    %cst_17 = arith.constant 0.000000e+00 : f32
    %58 = vector.shape_cast %43 : vector<1x256xi1> to vector<1x256xi1>
    %59 = vector.broadcast %58 : vector<1x256xi1> to vector<4x256xi1>
    %60 = vector.broadcast %cst_17 : f32 to vector<4x256xf32>
    %61 = arith.select %59, %57, %60 : vector<4x256xi1>, vector<4x256xf32>
    %62 = arith.truncf %61 : vector<4x256xf32> to vector<4x256xbf16>
    %c15_i32_18 = arith.constant 15 : i32
    %63 = tpu.dynamic_rotate %8 by %c15_i32_18 dim 1 : vector<4x256xf32>, i32 -> vector<4x256xf32>
    %64 = arith.andi %43, %49 : vector<1x256xi1>
    %cst_19 = arith.constant 0.000000e+00 : f32
    %65 = vector.shape_cast %64 : vector<1x256xi1> to vector<1x256xi1>
    %66 = vector.broadcast %65 : vector<1x256xi1> to vector<4x256xi1>
    %67 = vector.broadcast %cst_19 : f32 to vector<4x256xf32>
    %68 = arith.select %66, %63, %67 : vector<4x256xi1>, vector<4x256xf32>
    %69 = arith.truncf %68 : vector<4x256xf32> to vector<4x256xbf16>
    %c1_i32_20 = arith.constant 1 : i32
    %70 = tpu.dynamic_rotate %8 by %c1_i32_20 dim 1 : vector<4x256xf32>, i32 -> vector<4x256xf32>
    %cst_21 = arith.constant 0.000000e+00 : f32
    %71 = vector.shape_cast %47 : vector<1x256xi1> to vector<1x256xi1>
    %72 = vector.broadcast %71 : vector<1x256xi1> to vector<4x256xi1>
    %73 = vector.broadcast %cst_21 : f32 to vector<4x256xf32>
    %74 = arith.select %72, %70, %73 : vector<4x256xi1>, vector<4x256xf32>
    %75 = arith.truncf %74 : vector<4x256xf32> to vector<4x256xbf16>
    %76 = arith.truncf %8 : vector<4x256xf32> to vector<4x256xbf16>
    %c255_i32 = arith.constant 255 : i32
    %77 = tpu.dynamic_rotate %8 by %c255_i32 dim 1 : vector<4x256xf32>, i32 -> vector<4x256xf32>
    %cst_22 = arith.constant 0.000000e+00 : f32
    %78 = vector.shape_cast %49 : vector<1x256xi1> to vector<1x256xi1>
    %79 = vector.broadcast %78 : vector<1x256xi1> to vector<4x256xi1>
    %80 = vector.broadcast %cst_22 : f32 to vector<4x256xf32>
    %81 = arith.select %79, %77, %80 : vector<4x256xi1>, vector<4x256xf32>
    %82 = arith.truncf %81 : vector<4x256xf32> to vector<4x256xbf16>
    %c241_i32 = arith.constant 241 : i32
    %83 = tpu.dynamic_rotate %8 by %c241_i32 dim 1 : vector<4x256xf32>, i32 -> vector<4x256xf32>
    %84 = arith.andi %45, %47 : vector<1x256xi1>
    %cst_23 = arith.constant 0.000000e+00 : f32
    %85 = vector.shape_cast %84 : vector<1x256xi1> to vector<1x256xi1>
    %86 = vector.broadcast %85 : vector<1x256xi1> to vector<4x256xi1>
    %87 = vector.broadcast %cst_23 : f32 to vector<4x256xf32>
    %88 = arith.select %86, %83, %87 : vector<4x256xi1>, vector<4x256xf32>
    %89 = arith.truncf %88 : vector<4x256xf32> to vector<4x256xbf16>
    %c240_i32_24 = arith.constant 240 : i32
    %90 = tpu.dynamic_rotate %8 by %c240_i32_24 dim 1 : vector<4x256xf32>, i32 -> vector<4x256xf32>
    %cst_25 = arith.constant 0.000000e+00 : f32
    %91 = vector.shape_cast %45 : vector<1x256xi1> to vector<1x256xi1>
    %92 = vector.broadcast %91 : vector<1x256xi1> to vector<4x256xi1>
    %93 = vector.broadcast %cst_25 : f32 to vector<4x256xf32>
    %94 = arith.select %92, %90, %93 : vector<4x256xi1>, vector<4x256xf32>
    %95 = arith.truncf %94 : vector<4x256xf32> to vector<4x256xbf16>
    %c239_i32 = arith.constant 239 : i32
    %96 = tpu.dynamic_rotate %8 by %c239_i32 dim 1 : vector<4x256xf32>, i32 -> vector<4x256xf32>
    %97 = arith.andi %45, %49 : vector<1x256xi1>
    %cst_26 = arith.constant 0.000000e+00 : f32
    %98 = vector.shape_cast %97 : vector<1x256xi1> to vector<1x256xi1>
    %99 = vector.broadcast %98 : vector<1x256xi1> to vector<4x256xi1>
    %100 = vector.broadcast %cst_26 : f32 to vector<4x256xf32>
    %101 = arith.select %99, %96, %100 : vector<4x256xi1>, vector<4x256xf32>
    %102 = arith.truncf %101 : vector<4x256xf32> to vector<4x256xbf16>
    %103 = tpu.concatenate %56, %62, %69, %75, %76, %82, %89, %95, %102 in 0 : vector<4x256xbf16>, vector<4x256xbf16>, vector<4x256xbf16>, vector<4x256xbf16>, vector<4x256xbf16>, vector<4x256xbf16>, vector<4x256xbf16>, vector<4x256xbf16>, vector<4x256xbf16> -> vector<36x256xbf16>
    %c0_27 = arith.constant 0 : index
    %c0_28 = arith.constant 0 : index
    %104 = vector.load %arg4[%c0_27, %c0_28] : memref<12x36xbf16, #tpu.memory_space<vmem>>, vector<12x36xbf16>
    %cst_29 = arith.constant dense<0.000000e+00> : vector<12x256xf32>
    %105 = tpu.matmul %104, %103, %cst_29 {dimension_numbers = #tpu.dot_dimension_numbers<[1], [0], [0], [1], [0, 0, 1, 1], [], []>} : vector<12x36xbf16>, vector<36x256xbf16>, vector<12x256xf32> -> vector<12x256xf32>
    %106 = tpu.concatenate %105, %0 in 0 : vector<12x256xf32>, vector<4x256xf32> -> vector<16x256xf32>
    %c0_30 = arith.constant 0 : index
    %c0_31 = arith.constant 0 : index
    %107 = vector.load %arg5[%c0_30, %c0_31] : memref<16x256xf32, #tpu.memory_space<vmem>>, vector<16x256xf32>
    tpu.vector_store %arg5[%c0_30, %c0_31], %106 {strides = array<i32>} : memref<16x256xf32, #tpu.memory_space<vmem>>, vector<16x256xf32>,
    return
  }
  func.func @transform_0(%arg0: i32) -> (i32, i32) {
    %c0_i32 = arith.constant 0 : i32
    %c0_i32_0 = arith.constant 0 : i32
    return %c0_i32, %arg0 : i32, i32
  }
  func.func @transform_1(%arg0: i32) -> (i32, i32) {
    %c0_i32 = arith.constant 0 : i32
    %c0_i32_0 = arith.constant 0 : i32
    %c0_i32_1 = arith.constant 0 : i32
    return %c0_i32, %c0_i32_0 : i32, i32
  }
  func.func @transform_2(%arg0: i32) -> (i32, i32) {
    %c0_i32 = arith.constant 0 : i32
    %c0_i32_0 = arith.constant 0 : i32
    %c0_i32_1 = arith.constant 0 : i32
    return %c0_i32, %c0_i32_0 : i32, i32
  }
  func.func @transform_3(%arg0: i32) -> (i32, i32) {
    %c0_i32 = arith.constant 0 : i32
    %c0_i32_0 = arith.constant 0 : i32
    %c0_i32_1 = arith.constant 0 : i32
    return %c0_i32, %c0_i32_0 : i32, i32
  }
  func.func @transform_4(%arg0: i32) -> (i32, i32) {
    %c0_i32 = arith.constant 0 : i32
    %c0_i32_0 = arith.constant 0 : i32
    return %c0_i32, %arg0 : i32, i32
  }
}

</mosaic_0001>

<bundles_post_ra>
// kernel: tpu_custom_call.1
= control target key start
LH: loop header
LB: loop body
LE: loop exit
PB: predicated region body
PF: predicated region fallthrough
CT: control target
= control target key end

     0   :  { %9 = vsyncpa [#allocation3], 0  ;;  %s1230_s0 = inlined_call_operand.hbm [shape: f32[4,512], index: 0, kind: input, shape index: {}]   ;;  %s1231_s1 = inlined_call_operand.vmem [shape: f32[4,1], index: 1, kind: input, shape index: {}]   ;;  %s1232_s2 = inlined_call_operand.vmem [shape: f32[4,1], index: 2, kind: input, shape index: {}]   ;;  %s1233_s3 = inlined_call_operand.vmem [shape: bf16[12,36], index: 3, kind: input, shape index: {}]   ;;  %s1234_s4 = inlined_call_operand.hbm [shape: f32[16,512], index: 4, kind: output, shape index: {}]  }
   0x1   :  { %11 = vsyncpa [#allocation3 + $0x1], 0 }
   0x2   :  { %12 = vsyncpa [#allocation4], 0 }
   0x3   :  { %14 = vsyncpa [#allocation4 + $0x1], 0  ;;  %s911_s15 = smov 0   ;;  %s913_s16 = smov 0  }
   0x4   :  { %s915_s17 = smov 0   ;;  %s917_s18 = smov 0  }
   0x5 LB: > { %s932_s19 = sadd.s32 4294967295, %s870_s18   ;;  %s654_s20 = sadd.s32 4294967294, %s870_s18   ;;  %s870_s18 = sphi %s917_s18, %s1257_s18   ;;  %s866_s17 = sphi %s915_s17, %s1256_s17   ;;  %s862_s16 = sphi %s913_s16, %s1255_s16   ;;  %s858_s15 = sphi %s911_s15, %s1254_s15  }
   0x6   : > { %s936_s21 = sadd.s32 1, %s870_s18   ;;  %s27_s22 = sadd.s32 1, %s866_s17 }
   0x7   : > { %s24_s23 = ssub.s32 %s870_s18, %s936_s21  ;;  %p34_p0 = scmp.ne.s32.totalorder %s866_s17, %s862_s16 }
   0x8   : > { %p25_p1 = scmp.eq.s32.totalorder %s24_s23, 0  ;;  %p35_p2 = scmp.eq.s32.totalorder %s870_s18, 0 }
   0x9   : > { %p40_p3 = scmp.ne.s32.totalorder %s862_s16, %s858_s15  ;;  %p41_p4 = scmp.eq.s32.totalorder %s932_s19, 0 }
   0xa   : > { %s948_s24 = scalar_select %p25_p1, %s866_s17, %s27_s22  }
   0xb   : > { %p950_p5 = por %p35_p2, %p34_p0  ;;  %p954_p6 = por %p41_p4, %p40_p3 }
   0xc   : > { %p127_p7 = scmp.eq.s32.totalorder %s932_s19, 1  ;;  %p133_p8 = scmp.eq.s32.totalorder %s654_s20, 1 }
   0xd   : > { %p685_p10 = scmp.lt.s32.totalorder %s870_s18, 2  ;;  %s162_s29 = sand.u32 1, %s866_s17  }
   0xe   : > { %p961_p11 = por %p127_p7, %p34_p0  ;;  %p965_p12 = por %p133_p8, %p40_p3 }
   0xf   : > { %s671_s30 = sshll.u32 %s870_s18, 7  ;;  %s657_s5 = sshll.u32 %s162_s29, 3 }
  0x10   : > { %s1238_s27 = scalar_select %p961_p11, 1, 0 }
  0x11   : > { %s1239_s28 = scalar_select %p965_p12, 1, 0 }
  0x12   : > { %s974_s8 = scalar_lea.hbm %s1230_s0, %s671_s30  ;;  %s166_s9 = scalar_lea.vmem [#allocation2], %s657_s5 }
  0x13   : > { %s174_s10 = sshll.u32 %s166_s9, 4  ;;  %p978_p13 = pnand %p685_p10, %p950_p5  ;;  %s982_s10 = int_to_ptr.vmem [resolvable:$true] %s174_s10 }
  0x14   : > { %s163_s12 = scalar_lea.sflag [#allocation3], %s162_s29  ;;  %s774_s13 = scalar_lea.hbm %s974_s8, 128 }
  0x15   : > { %p775_p2 = scmp.ne.s32.totalorder %s974_s8, %s774_s13  ;;  %p776_p3 = pneg %p978_p13 }
  0x16   : > { %s779_s22 = scalar_lea.hbm %s1230_s0, 256  ;;  %p780_p5 = scmp.lt.u32.totalorder %s974_s8, %s1230_s0 }
  0x17   : > { %p777_p4 = pnand %p776_p3, %p775_p2  ;;  %p781_p8 = scmp.lt.u32.totalorder %s779_s22, %s774_s13 }
  0x18   : > { %p783_p9 = scmp.lt.u32.totalorder %s774_s13, %s974_s8 }
  0x19   : > { %p778_p7 = pneg %p777_p4  ;;  %p782_p10 = por %p781_p8, %p780_p5 }
  0x1b   : > { %p784_p0 = por %p783_p9, %p782_p10 }
  0x1d   : > { %p785_p1 = pnand %p784_p0, %p778_p7 }
  0x1f   : > { %788 = shalt.err (!%p785_p1)
}
  0x20   : > { %s789_s29 = scalar_lea.vmem %s982_s10, 128  ;;  %s872_s30 = smov [#allocation2]  }
  0x21   : > { %p790_p2 = scmp.ne.s32.totalorder %s982_s10, %s789_s29  ;;  %s794_s5 = sshll.u32 %s872_s30, 4  ;;  %s795_s5 = int_to_ptr.vmem [resolvable:$false] %s794_s5 }
  0x22   : > { %s796_s6 = scalar_lea.vmem %s795_s5, 256  ;;  %p797_p11 = scmp.lt.s32.totalorder %s982_s10, %s795_s5 }
  0x23   : > { %p792_p4 = pnand %p790_p2, %p776_p3  ;;  %p798_p5 = scmp.lt.s32.totalorder %s796_s6, %s789_s29 }
  0x25   : > { %p793_p12 = pneg %p792_p4  ;;  %p799_p8 = por %p798_p5, %p797_p11 }
  0x27   : > { %p800_p9 = pnand %p799_p8, %p793_p12 }
  0x29   : > { %803 = shalt.err (!%p800_p9)
}
  0x2a   : > { %680 = dma.hbm_to_vmem [thread:$0]  (!%p978_p13), %s974_s8, 128, %s982_s10, %s163_s12  }
  0x2b   : > { %p1241_p0 = scmp.lt.s32.totalorder %s870_s18, 3  ;;  %p1242_p1 = scmp.ge.s32.totalorder %s870_s18, 1 }
  0x2d   : > { %p180_p3 = pnand %p1242_p1, %p1241_p0 }
  0x2e   : > { %s1016_s7 = sand.u32 (!%p180_p3), 1, %s862_s16  }
  0x2f   : > { %183 = sbr.rel (%p180_p3) target bundleno = 579 (0x243), region = 36  ;;  %s661_s9 = sshll.u32 (!%p180_p3), %s1016_s7, 3 }
  0x30   : > { %s186_s13 = scalar_lea.sflag (!%p180_p3), [#allocation3], %s1016_s7  ;;  %s189_s14 = scalar_lea.vmem (!%p180_p3), [#allocation2], %s661_s9 }
  0x36   : > { %849 = dma.done.wait (%p954_p6), %s186_s13, 128  }
  0x37   : > { %851 = vsyncadd (%p954_p6), %s186_s13, 4294967168  ;;  %v873_v0 = vmov 0   ;;  %v218_v1 = vld [vmem:[%s1231_s1] sm:$0xf]  ;;  %v874_v3 = vmov 839922192   ;;  %v226_v5 = vlaneseq }
  0x38   : > { %731 = vset.pattern.permute.xlu0 %v873_v0  ;;  %547 = vmatprep.mubr.bf16.mxu0 %v873_v0  ;;  %v232_v2 = vld [vmem:[%s1232_s2] sm:$0xf]  ;;  %v224_v4 = vunpack.c.l.s4 %v874_v3  ;;  %s875_s26 = smov 17   ;;  %s876_s20 = smov 16   ;;  %vm463_vm12 = vcmask 1041408  }
  0x39   : > { %221 = vperm.xlu0 %731, %v218_v1   ;;  %v227_v7 = vshrl.u32 %v226_v5, 7  ;;  %v1030_v11 = vld [vmem:[%s189_s14] sm:$0xff]  ;;  %s877_s22 = smov 127   ;;  %s878_s23 = smov 15   ;;  %v1042_v19 = vand.u32 127, %v226_v5 }
  0x3a   : > { %v225_v6 = vunpack.c.0.s8 %v224_v4  ;;  %s879_s25 = smov 112   ;;  %s880_s29 = smov 1  }
  0x3b   : > { %s881_s30 = smov 113   ;;  %s882_s5 = smov 111   ;;  %v249_v20 = vadd.s32 128, %v1042_v19  ;;  %v254_v21 = vand.u32 255, %v1042_v19  ;;  %vm313_vm1 = vcmp.lt.s32.totalorder %v1042_v19, 17  ;;  %vm330_vm4 = vcmp.lt.s32.totalorder %v1042_v19, 16 }
  0x3c   : > { %v228_v8 = vsub.s32 %v225_v6, %v227_v7  ;;  %vm379_vm7 = vcmp.lt.s32.totalorder %v1042_v19, 127  ;;  %vm345_vm8 = vcmp.lt.s32.totalorder %v1042_v19, 15  ;;  %vm411_vm9 = vcmp.lt.s32.totalorder %v1042_v19, 112  ;;  %s662_s13 = sshll.u32 %s1016_s7, 5  ;;  %s672_s10 = sshll.u32 %s932_s19, 8 }
  0x3d   : > { %235 = vperm.xlu0 %731, %v232_v2   ;;  %v261_v22 = vand.u32 255, %v249_v20  ;;  %v1046_v23 = vand.u32 15, %v254_v21  ;;  %vm1050_vm0 = vcmp.ge.s32.totalorder %v254_v21, 16  ;;  %vm362_vm10 = vcmp.lt.s32.totalorder %v1042_v19, 1  ;;  %s213_s14 = scalar_lea.vmem [#allocation5], %s662_s13  ;;  %s568_s19 = scalar_lea.sflag [#allocation4], %s1016_s7 }
  0x3e   : > { %vm394_vm14 = vcmp.lt.s32.totalorder %v1042_v19, 113  ;;  %s581_s8 = sshll.u32 %s213_s14, 4  ;;  %p1251_p11 = scmp.ne.s32.totalorder %s1238_s27, 0  ;;  %s1177_s8 = int_to_ptr.vmem [resolvable:$true] %s581_s8 }
  0x3f   : > { %v1048_v24 = vand.u32 15, %v261_v22  ;;  %vm302_vm2 = vcmp.ge.s32.totalorder %v1046_v23, 1  ;;  %vm304_vm5 = vcmp.lt.s32.totalorder %v1046_v23, 15  ;;  %vm1072_vm11 = vcmp.lt.s32.totalorder %v261_v22, 240 }
  0x40   : > { %vm1082_vm13 = vmand %vm1050_vm0, %vm304_vm5  ;;  %v559_v23 = vcombine.low %v1030_v11, %v1030_v11 }
  0x41   : > { %vm303_vm3 = vcmp.ge.s32.totalorder %v1048_v24, 1  ;;  %vm305_vm6 = vcmp.lt.s32.totalorder %v1048_v24, 15  ;;  %vm1091_vm15 = vmand %vm1050_vm0, %vm302_vm2 }
  0xb8   : > { %v222_v9 = vpop.permute.xlu0 %221 }
  0xb9   : > { %v229_v10 = vrot.slane %v222_v9, %v228_v8 }
  0xbb   : > { %v231_v13 = vmul.f32 %v229_v10, %v1030_v11 }
  0xbc   : > { %v236_v12 = vpop.permute.xlu0 %235 }
  0xbd   : > { %v243_v14 = vrot.slane %v236_v12, %v228_v8 }
  0xbf   : > { %v245_v15 = vadd.f32 %v243_v14, %v231_v13 }
  0xc1   : > { %v1033_v16 = vmax.f32 %v245_v15, 0.0 }
  0xc3   : > { %v1037_v17 = vcombine.high %v1033_v16, %v1033_v16  ;;  %v373_v32 = vpack.c.bf16 %v1033_v16, %v1033_v16 }
  0xc5   : > { %v742_v18 = vpack.i.bf16 %v1037_v17, %v1033_v16  ;;  %v374_v43 = vpack.c.bf16 %v1037_v17, %v1037_v17 }
  0xc7   : > { %743 = vrot.lane.b32.xlu0 %v742_v18, %s875_s26  ;;  %733 = vrot.lane.b32.xlu1 %v742_v18, %s876_s20  ;;  %s1182_s26 = scalar_lea.hbm %s1234_s4, %s672_s10 }
  0xcb   : > { %753 = vrot.lane.b32.xlu0 %v742_v18, %s877_s22  ;;  %738 = vrot.lane.b32.xlu1 %v742_v18, %s878_s23  ;;  %s804_s22 = scalar_lea.vmem %s1177_s8, 512  ;;  %s883_s23 = smov [#allocation5]  }
  0xcc   : > { %p805_p6 = scmp.ne.s32.totalorder %s1177_s8, %s804_s22 }
  0xce   : > { %p806_p12 = pnand %p805_p6, %p1251_p11 }
  0xcf   : > { %763 = vrot.lane.b32.xlu0 %v742_v18, %s879_s25  ;;  %748 = vrot.lane.b32.xlu1 %v742_v18, %s880_s29  ;;  %s808_s25 = sshll.u32 %s883_s23, 4  ;;  %s809_s25 = int_to_ptr.vmem [resolvable:$false] %s808_s25 }
  0xd0   : > { %p807_p13 = pneg %p806_p12  ;;  %s810_s29 = scalar_lea.vmem %s809_s25, 1024 }
  0xd1   : > { %p811_p7 = scmp.lt.s32.totalorder %s1177_s8, %s809_s25  ;;  %p812_p10 = scmp.lt.s32.totalorder %s810_s29, %s804_s22 }
  0xd3   : > { %758 = vrot.lane.b32.xlu1 %v742_v18, %s881_s30  ;;  %p813_p2 = por %p812_p10, %p811_p7 }
  0xd5   : > { %p814_p4 = pnand %p813_p2, %p807_p13 }
  0xd7   : > { %768 = vrot.lane.b32.xlu1 %v742_v18, %s882_s5 }
 0x139   : > { %v744_v26 = vpop.permute.xlu0 %743  ;;  %v734_v27 = vpop.permute.xlu1 %733 }
 0x13a   : > { %v746_v28 = vunpack.i.h.bf16 %v744_v26  ;;  %v745_v29 = vunpack.i.l.bf16 %v744_v26  ;;  %v736_v30 = vunpack.i.h.bf16 %v734_v27  ;;  %v735_v31 = vunpack.i.l.bf16 %v734_v27 }
 0x13c   : > { %v314_v33 = vsel %vm313_vm1, %v745_v29, %v746_v28  ;;  %v331_v34 = vsel %vm330_vm4, %v735_v31, %v736_v30  ;;  %v332_v35 = vsel %vm330_vm4, %v736_v30, %v735_v31  ;;  %v315_v49 = vsel %vm313_vm1, %v746_v28, %v745_v29 }
 0x13d   : > { %v323_v36 = vsel %vm303_vm3, %v314_v33, 0.0  ;;  %v337_v37 = vsel %vm1050_vm0, %v332_v35, 0.0  ;;  %v340_v38 = vpack.c.bf16 %v331_v34, %v331_v34  ;;  %v754_v39 = vpop.permute.xlu0 %753  ;;  %v739_v40 = vpop.permute.xlu1 %738  ;;  %vm470_vm0 = vcmask 1043456  }
 0x13e   : > { %v756_v41 = vunpack.i.h.bf16 %v754_v39  ;;  %v755_v44 = vunpack.i.l.bf16 %v754_v39  ;;  %v741_v46 = vunpack.i.h.bf16 %v739_v40  ;;  %v740_v47 = vunpack.i.l.bf16 %v739_v40 }
 0x13f   : > { %v325_v50 = vpack.c.bf16 %v323_v36, %v323_v36  ;;  %v339_v51 = vpack.c.bf16 %v337_v37, %v337_v37  ;;  %v442_v52 = vrot.slane %v340_v38, 6  ;;  %vm426_vm1 = vcmp.lt.s32.totalorder %v1042_v19, 111 }
 0x140   : > { %v380_v53 = vsel %vm379_vm7, %v755_v44, %v756_v41  ;;  %v381_v54 = vsel %vm379_vm7, %v756_v41, %v755_v44  ;;  %v346_v55 = vsel %vm345_vm8, %v740_v47, %v741_v46  ;;  %v347_v56 = vsel %vm345_vm8, %v741_v46, %v740_v47  ;;  %vm398_vm7 = vmand %vm1072_vm11, %vm303_vm3 }
 0x141   : > { %v764_v57 = vpop.permute.xlu0 %763  ;;  %v749_v58 = vpop.permute.xlu1 %748  ;;  %v386_v59 = vsel %vm304_vm5, %v380_v53, 0.0  ;;  %v387_v60 = vsel %vm305_vm6, %v381_v54, 0.0  ;;  %v354_v61 = vsel %vm1082_vm13, %v347_v56, 0.0  ;;  %vm475_vm4 = vcmask 1045504  }
 0x142   : > { %v766_v62 = vunpack.i.h.bf16 %v764_v57  ;;  %v322_v63 = vsel %vm1091_vm15, %v315_v49, 0.0  ;;  %v388_v0 = vpack.c.bf16 %v386_v59, %v386_v59  ;;  %v389_v1 = vpack.c.bf16 %v387_v60, %v387_v60 }
 0x143   : > { %v765_v2 = vunpack.i.l.bf16 %v764_v57  ;;  %v441_v3 = vrot.slane %v339_v51, 6  ;;  %v751_v4 = vunpack.i.h.bf16 %v749_v58  ;;  %v750_v5 = vunpack.i.l.bf16 %v749_v58 }
 0x144   : > { %v355_v6 = vsel %vm305_vm6, %v346_v55, 0.0  ;;  %v356_v7 = vpack.c.bf16 %v354_v61, %v354_v61  ;;  %v469_v12 = vsel %vm463_vm12, %v325_v50, %v442_v52  ;;  %v453_v13 = vrot.slane %v388_v0, 6  ;;  %v772_v0 = vld [vmem:[%s1233_s3] sm:$0x3f]  }
 0x145   : > { %v412_v8 = vsel %vm411_vm9, %v765_v2, %v766_v62  ;;  %v413_v9 = vsel %vm411_vm9, %v766_v62, %v765_v2  ;;  %v759_v10 = vpop.permute.xlu1 %758  ;;  %v364_v15 = vsel %vm362_vm10, %v751_v4, %v750_v5  ;;  %v454_v20 = vrot.slane %v389_v1, 6 }
 0x146   : > { %v419_v14 = vsel %vm1072_vm11, %v413_v9, 0.0  ;;  %v761_v18 = vunpack.i.h.bf16 %v759_v10  ;;  %v760_v21 = vunpack.i.l.bf16 %v759_v10  ;;  %v357_v22 = vpack.c.bf16 %v355_v6, %v355_v6 }
 0x147   : > { %v363_v25 = vsel %vm362_vm10, %v750_v5, %v751_v4  ;;  %v420_v26 = vpack.c.bf16 %v412_v8, %v412_v8  ;;  %v421_v27 = vpack.c.bf16 %v419_v14, %v419_v14  ;;  %v369_v29 = vsel %vm302_vm2, %v364_v15, 0.0 }
 0x148   : > { %v370_v28 = vsel %vm303_vm3, %v363_v25, 0.0  ;;  %v395_v30 = vsel %vm394_vm14, %v760_v21, %v761_v18  ;;  %v396_v31 = vsel %vm394_vm14, %v761_v18, %v760_v21  ;;  %v446_v35 = vrot.slane %v357_v22, 4 }
 0x149   : > { %v769_v33 = vpop.permute.xlu1 %768  ;;  %v372_v34 = vpack.c.bf16 %v370_v28, %v370_v28  ;;  %v403_v36 = vsel %vm302_vm2, %v395_v30, 0.0  ;;  %v404_v37 = vsel %vm398_vm7, %v396_v31, 0.0  ;;  %v445_v45 = vrot.slane %v356_v7, 4  ;;  %vm430_vm2 = vmand %vm1072_vm11, %vm305_vm6 }
 0x14a   : > { %v771_v38 = vunpack.i.h.bf16 %v769_v33  ;;  %v770_v39 = vunpack.i.l.bf16 %v769_v33  ;;  %v405_v40 = vpack.c.bf16 %v403_v36, %v403_v36  ;;  %v406_v41 = vpack.c.bf16 %v404_v37, %v404_v37 }
 0x14b   : > { %v450_v44 = vrot.slane %v372_v34, 2  ;;  %v324_v46 = vpack.c.bf16 %v322_v63, %v322_v63  ;;  %v461_v47 = vrot.slane %v420_v26, 2  ;;  %v474_v48 = vsel %vm470_vm0, %v469_v12, %v446_v35 }
 0x14c   : > { %v371_v49 = vpack.c.bf16 %v369_v29, %v369_v29  ;;  %v457_v50 = vrot.slane %v405_v40, 4  ;;  %v458_v51 = vrot.slane %v406_v41, 4  ;;  %v428_v52 = vsel %vm426_vm1, %v771_v38, %v770_v39 }
 0x14d   : > { %v480_v53 = vsel %vm475_vm4, %v474_v48, %v450_v44  ;;  %v466_v55 = vsel %vm463_vm12, %v324_v46, %v441_v3  ;;  %v462_v56 = vrot.slane %v421_v27, 2  ;;  %v487_v57 = vsel %vm463_vm12, %v374_v43, %v454_v20 }
 0x14e   : > { %515 = vmatprep.subr.bf16.mxu0 %v480_v53  ;;  %v449_v54 = vrot.slane %v371_v49, 2  ;;  %v472_v58 = vsel %vm470_vm0, %v466_v55, %v445_v45  ;;  %v491_v59 = vsel %vm470_vm0, %v487_v57, %v458_v51  ;;  %v484_v24 = vsel %vm463_vm12, %v373_v32, %v453_v13 }
 0x14f   : > { %v427_v42 = vsel %vm426_vm1, %v770_v39, %v771_v38  ;;  %v496_v61 = vsel %vm475_vm4, %v491_v59, %v462_v56  ;;  %v489_v17 = vsel %vm470_vm0, %v484_v24, %v457_v50  ;;  %v436_v43 = vsel %vm430_vm2, %v428_v52, 0.0 }
 0x150   : > { %v477_v60 = vsel %vm475_vm4, %v472_v58, %v449_v54  ;;  %v493_v62 = vsel %vm475_vm4, %v489_v17, %v461_v47  ;;  %v435_v16 = vsel %vm304_vm5, %v427_v42, 0.0  ;;  %v438_v32 = vpack.c.bf16 %v436_v43, %v436_v43 }
 0x151   : > { %516 = vmatpush1.bf16.msra.mxu0 %v477_v60  ;;  %v437_v63 = vpack.c.bf16 %v435_v16, %v435_v16  ;;  %vm505_vm3 = vcmask 293888  }
 0x152   : > { %517 = vmatprep.subr.bf16.mxu0 %v496_v61 }
 0x153   : > { %v510_v19 = vsel %vm463_vm12, %v437_v63, 0 }
 0x155   : > { %518 = vmatpush1.bf16.msra.mxu0 %v493_v62 }
 0x156   : > { %664 = vmatprep.subr.msk.bf16.mxu0 %vm463_vm12, %v438_v32 }
 0x159   : > { %520 = vmatpush1.bf16.msra.mxu0 %v510_v19 }
 0x15c   : > { %665 = vmatmul.mubr.msk.bf16.vlgmr.msra.gmra.mrb[0].mxu0 %vm505_vm3, %v772_v0 }
 0x22f   : > { %v549_v1 = vpop.f32.mrb[0].mxu0 }
 0x230   : > { %563 = vst [vmem:[%s213_s14] sm:$0xff] %v549_v1  ;;  %v551_v2 = vpop.f32.mrb[1].mxu0 }
 0x231   : > { %564 = vst [vmem:[%s213_s14 + $0x8] sm:$0xff] %v551_v2  ;;  %v553_v3 = vpop.f32.mrb[2].mxu0 }
 0x232   : > { %v561_v4 = vsel %vm470_vm0, %v553_v3, %v559_v23  ;;  %v555_v5 = vpop.f32.mrb[3].mxu0 }
 0x233   : > { %565 = vst [vmem:[%s213_s14 + $0x10] sm:$0xff] %v561_v4  ;;  %v562_v6 = vsel %vm470_vm0, %v555_v5, %v1030_v11 }
 0x234   : > { %566 = vst [vmem:[%s213_s14 + $0x18] sm:$0xff] %v562_v6 }
 0x235   : > { %817 = shalt.err (!%p814_p4)
}
 0x236   : > { %s818_s30 = scalar_lea.hbm %s1182_s26, 512  ;;  %s822_s9 = scalar_lea.hbm %s1234_s4, 1024 }
 0x237   : > { %p819_p5 = scmp.ne.s32.totalorder %s1182_s26, %s818_s30  ;;  %p823_p0 = scmp.lt.u32.totalorder %s1182_s26, %s1234_s4 }
 0x238   : > { %p824_p1 = scmp.lt.u32.totalorder %s822_s9, %s818_s30  ;;  %p826_p6 = scmp.lt.u32.totalorder %s818_s30, %s1182_s26 }
 0x239   : > { %p820_p8 = pnand %p819_p5, %p1251_p11 }
 0x23a   : > { %p825_p3 = por %p824_p1, %p823_p0 }
 0x23b   : > { %p821_p9 = pneg %p820_p8 }
 0x23c   : > { %p827_p12 = por %p826_p6, %p825_p3 }
 0x23e   : > { %p828_p13 = pnand %p827_p12, %p821_p9 }
 0x240   : > { %831 = shalt.err (!%p828_p13)
}
 0x241   : > { %s884_s10 = smov 256   ;;  %s885_s11 = smov 512  }
 0x242   : > { %675 = dma.vmem_to_hbm [thread:$0]  (%p1251_p11), %s1177_s8, 512, %s1182_s26, %s568_s19, %s884_s10, %s885_s11, %s876_s20  }
 0x243 PF: > { %s596_s12 = sand.u32 1, %s858_s15   ;;  %p1252_p7 = scmp.ne.s32.totalorder %s1239_s28, 0 }
 0x244   : > { %p1253_p10 = scmp.ge.s32.totalorder %s870_s18, 2  ;;  %s597_s22 = scalar_lea.sflag [#allocation4], %s596_s12 }
 0x246   : > { %p682_p2 = pnand %p1253_p10, %p1252_p7 }
 0x248   : > { %853 = dma.done.wait (!%p682_p2), %s597_s22, 512  }
 0x249   : > { %855 = vsyncadd (!%p682_p2), %s597_s22, 4294966784  ;;  %p17_p4 = scmp.ge.s32.totalorder %s936_s21, 4   ;;  %s1254_s15 = smov %s862_s16 }
 0x24a   : > { %s1255_s16 = smov %s866_s17  ;;  %s1256_s17 = smov %s948_s24 }
 0x24b   : > { %s1257_s18 = smov %s936_s21  ;;  %19 = sbr.rel (!%p17_p4) target bundleno = 5 (0x5), region = 81 }
 0x252   :  { %602 = vsyncpa [#allocation3], 1 }
 0x253   :  { %604 = vsyncpa [#allocation3 + $0x1], 1 }
 0x254   :  { %605 = vsyncpa [#allocation4], 1 }
 0x255   :  { %607 = vsyncpa [#allocation4 + $0x1], 1 }

</bundles_post_ra>
